<compile_context>
chip_gen: v5e
topology: v5e:2x2
jax: 0.10.0
libtpu: 0.0.40
codegen_flags: <defaults>
</compile_context>

<pallas_src>
import numpy as np
import jax
import jax.numpy as jnp
from jax.experimental import pallas as pl
from jax.experimental.pallas import tpu as pltpu


def _round_up(x, m):
    return ((x + m - 1) // m) * m


def _cdiv(a, b):
    return (a + b - 1) // b


def _vmem_budget():
    """Generation-aware VMEM budget: physical capacity minus 16 MiB headroom,
    capped at 100 MiB (v7x: 64 MiB/TC -> 48 MiB; v5e/v6e: 128 MiB -> 100 MiB)."""
    cap = 64 << 20
    try:
        cap = int(pltpu.get_tpu_info().vmem_capacity_bytes)
    except Exception:
        pass
    return max(16 << 20, min(cap - (16 << 20), 100 << 20))


# ----------------------------------------------------------------------------
# Kernels
# ----------------------------------------------------------------------------
def _dlinear_kernel(x_ref, w_ref, b_ref, out_ref):
    """Single-shot: out = x @ W + b.
    x:[TB,F] (f32/bf16), W:[F,N] (bf16/f32, resident), b:[1,N] f32, out:[TB,N]."""
    x = x_ref[...].astype(w_ref.dtype)            # cast in-kernel, not in wrapper
    acc = jnp.dot(x, w_ref[...], preferred_element_type=jnp.float32)
    out_ref[...] = (acc + b_ref[...]).astype(out_ref.dtype)


def _dlinear_kernel_ksplit(x_ref, w_ref, b_ref, out_ref, acc_ref):
    """F-tiled path: accumulate partial products in an f32 VMEM scratch.
    Grid = (batch tiles, F tiles); F axis is last ("arbitrary")."""
    kk = pl.program_id(1)

    @pl.when(kk == 0)
    def _init():
        acc_ref[...] = jnp.zeros_like(acc_ref)

    x = x_ref[...].astype(w_ref.dtype)
    acc_ref[...] += jnp.dot(x, w_ref[...], preferred_element_type=jnp.float32)

    @pl.when(kk == pl.num_programs(1) - 1)
    def _fin():
        out_ref[...] = (acc_ref[...] + b_ref[...]).astype(out_ref.dtype)


# ----------------------------------------------------------------------------
# Offline parameter folding (pad + moving-avg + both Linears -> one weight).
# ----------------------------------------------------------------------------
def fold_dlinear_params(W_s, b_s, W_t, b_t, *, L, C, k,
                        weight_dtype=jnp.bfloat16, lane=128,
                        lane_pad_max_waste=1.25):
    """W_s/W_t: [O, T, L*C] per-output-channel nn.Linear weights; b_*: [O, T].

    Returns (W_eff, b_eff): W_eff [L*C, N'] in `weight_dtype`, b_eff [1, N'] f32.
    Column index = t*O + o.  N' = round_up(T*O, 128) only if the padding waste
    is <= lane_pad_max_waste, else N' = T*O (unpadded, masked stores)."""
    O, T, F = W_s.shape
    assert F == L * C
    assert k % 2 == 1, "DLinear requires odd kernel_size (else shapes mismatch)"
    pad = (k - 1) // 2

    # A_time[l_in, l_out]: contribution of x[:, l_in, :] to trend[:, l_out, :]
    # for the replicate-padded AvgPool1d(kernel_size=k, stride=1).
    A_time = np.zeros((L, L), dtype=np.float64)
    for l_out in range(L):
        for j in range(k):
            l_in = min(max(l_out + j - pad, 0), L - 1)
            A_time[l_in, l_out] += 1.0 / k
    A = np.kron(A_time, np.eye(C))                 # [F, F]; flat index = l*C + c

    # Pack per-output-channel weights to [F, T*O], column = t*O + o.
    N = T * O
    Ws_p = np.asarray(W_s, np.float64).transpose(2, 1, 0).reshape(F, N)
    Wt_p = np.asarray(W_t, np.float64).transpose(2, 1, 0).reshape(F, N)
    W_eff = Ws_p + A @ (Wt_p - Ws_p)               # out = x_flat @ W_eff + b
    b_eff = (np.asarray(b_s, np.float64).T
             + np.asarray(b_t, np.float64).T).reshape(1, N)

    # Conditional lane padding of the output/N dimension.
    Npad = _round_up(N, lane)
    if Npad != N and Npad > lane_pad_max_waste * N:
        Npad = N                                   # unpadded beats 5x writeback bytes

    W_pad = np.zeros((F, Npad), dtype=np.float32)
    W_pad[:, :N] = W_eff
    b_pad = np.zeros((1, Npad), dtype=np.float32)
    b_pad[:, :N] = b_eff
    return jnp.asarray(W_pad, dtype=weight_dtype), jnp.asarray(b_pad, jnp.float32)


# ----------------------------------------------------------------------------
# Wrapper: batch-tiled pallas_call (resident weight or F-split).
# ----------------------------------------------------------------------------
def dlinear_forward(x, W_eff, b_eff, *, T, O, batch_tile=512,
                    out_dtype=jnp.float32, force_ksplit=False, ksplit_tk=512):
    """x: [B, L, C].  Returns [B, T, O] float32 (or [B, T] if O == 1)."""
    B, L, C = x.shape
    F = L * C
    N = W_eff.shape[1]
    assert W_eff.shape[0] == F and N >= T * O

    if x.dtype not in (jnp.float32, jnp.bfloat16):
        x = x.astype(jnp.float32)
    x_flat = x.reshape(B, F)                       # no dtype copy; cast is in-kernel

    x_elt = jnp.dtype(x_flat.dtype).itemsize
    w_elt = jnp.dtype(W_eff.dtype).itemsize
    out_elt = jnp.dtype(out_dtype).itemsize
    budget = _vmem_budget()

    # Resident W/b are double-buffered by Pallas even with a constant index_map.
    resident = 2 * F * N * w_elt + 2 * N * 4
    per_row = 2 * F * x_elt + 2 * N * out_elt      # double-buffered x / out per batch row
    use_ksplit = force_ksplit or (resident + 8 * per_row > int(0.8 * budget))

    if not use_ksplit:
        avail = int(0.8 * budget) - resident
        tb_cap = max(8, (avail // per_row) // 8 * 8)
        # >=2 grid steps when B allows, so both v7x TensorCores get work.
        TB = max(8, min(batch_tile, tb_cap, _round_up(_cdiv(B, 2), 8)))
        Bp = _round_up(B, TB)
        if Bp != B:
            x_flat = jnp.pad(x_flat, ((0, Bp - B), (0, 0)))
        grid = (Bp // TB,)

        vmem_need = resident + TB * per_row
        cost = pl.CostEstimate(
            flops=2 * Bp * F * N,
            transcendentals=0,
            bytes_accessed=x_elt * Bp * F + w_elt * F * N + 4 * N + out_elt * Bp * N,
        )
        out_flat = pl.pallas_call(
            _dlinear_kernel,
            out_shape=jax.ShapeDtypeStruct((Bp, N), out_dtype),
            grid=grid,
            in_specs=[
                pl.BlockSpec((TB, F), lambda i: (i, 0)),   # x: streamed per batch tile
                pl.BlockSpec((F, N), lambda i: (0, 0)),    # W_eff: VMEM-resident
                pl.BlockSpec((1, N), lambda i: (0, 0)),    # b_eff: VMEM-resident (f32)
            ],
            out_specs=pl.BlockSpec((TB, N), lambda i: (i, 0)),
            compiler_params=pltpu.CompilerParams(
                dimension_semantics=("parallel",),
                vmem_limit_bytes=int(min(budget, max(16 << 20, 2 * vmem_need))),
            ),
            cost_estimate=cost,
        )(x_flat, W_eff, b_eff)
    else:
        # ---- K-split over F: W streamed in (TK, N) tiles, f32 accumulator ----
        TK = max(128, (int(ksplit_tk) // 128) * 128)
        Fpad = _round_up(F, TK)
        W_use = W_eff if Fpad == F else jnp.pad(W_eff, ((0, Fpad - F), (0, 0)))
        # (zero row/column padding is exact; for production fold with padding offline)

        resident_k = 2 * TK * N * w_elt + 2 * N * 4
        per_row_k = 2 * TK * x_elt + 2 * N * out_elt + N * 4   # + f32 accumulator
        avail = int(0.8 * budget) - resident_k
        tb_cap = max(8, (max(avail, 0) // per_row_k) // 8 * 8)
        TB = max(8, min(batch_tile, tb_cap, _round_up(_cdiv(B, 2), 8)))
        Bp = _round_up(B, TB)
        if Bp != B or Fpad != F:
            x_flat = jnp.pad(x_flat, ((0, Bp - B), (0, Fpad - F)))
        grid = (Bp // TB, Fpad // TK)

        vmem_need = resident_k + TB * per_row_k
        cost = pl.CostEstimate(
            flops=2 * Bp * Fpad * N,
            transcendentals=0,
            bytes_accessed=(x_elt * Bp * Fpad + w_elt * Fpad * N * (Bp // TB)
                            + 4 * N + out_elt * Bp * N),
        )
        out_flat = pl.pallas_call(
            _dlinear_kernel_ksplit,
            out_shape=jax.ShapeDtypeStruct((Bp, N), out_dtype),
            grid=grid,
            in_specs=[
                pl.BlockSpec((TB, TK), lambda i, kk: (i, kk)),  # x tile
                pl.BlockSpec((TK, N), lambda i, kk: (kk, 0)),   # W tile (streamed over F)
                pl.BlockSpec((1, N), lambda i, kk: (0, 0)),     # bias (f32, resident)
            ],
            out_specs=pl.BlockSpec((TB, N), lambda i, kk: (i, 0)),
            scratch_shapes=[pltpu.VMEM((TB, N), jnp.float32)],
            compiler_params=pltpu.CompilerParams(
                dimension_semantics=("parallel", "arbitrary"),
                vmem_limit_bytes=int(min(budget, max(16 << 20, 2 * vmem_need))),
            ),
            cost_estimate=cost,
        )(x_flat, W_use, b_eff)

    out = out_flat[:B, : T * O].reshape(B, T, O).astype(jnp.float32)
    if O == 1:
        out = out[..., 0]                          # PyTorch returns [B, T] when O == 1
    return out


# ----------------------------------------------------------------------------
# Pure-JAX mirror of the PyTorch DLinear.forward (for verification).
# ----------------------------------------------------------------------------
def dlinear_reference(x, W_s, b_s, W_t, b_t, *, k):
    B, L, C = x.shape
    O, T, F = W_s.shape
    pad = (k - 1) // 2
    front = jnp.repeat(x[:, 0:1, :], pad, axis=1)
    end = jnp.repeat(x[:, L - 1:L, :], pad, axis=1)
    xp = jnp.concatenate([front, x, end], axis=1)              # [B, L+2*pad, C]
    mm = jnp.stack([xp[:, t:t + k, :].mean(axis=1) for t in range(L)], axis=1)
    res = x - mm
    rf = res.reshape(B, F)
    mf = mm.reshape(B, F)
    hi = jax.lax.Precision.HIGHEST
    season_out = jnp.einsum("bf,otf->bto", rf, W_s, precision=hi) + b_s.T[None]
    trend_out = jnp.einsum("bf,otf->bto", mf, W_t, precision=hi) + b_t.T[None]
    out = season_out + trend_out
    if O == 1:
        out = out[..., 0]
    return out


if __name__ == "__main__":
    # DLinear(L=16, T=8, in_channel=4, out_channel=3, kernel_size=5); batch B=2.
    B, L, T, C, O, k = 2, 16, 8, 4, 3, 5
    F = L * C

    key = jax.random.PRNGKey(0)
    kx, k1, k2, k3, k4 = jax.random.split(key, 5)
    x = jax.random.normal(kx, (B, L, C), dtype=jnp.float32)
    W_s = 0.1 * jax.random.normal(k1, (O, T, F), dtype=jnp.float32)
    b_s = 0.1 * jax.random.normal(k2, (O, T), dtype=jnp.float32)
    W_t = 0.1 * jax.random.normal(k3, (O, T, F), dtype=jnp.float32)
    b_t = 0.1 * jax.random.normal(k4, (O, T), dtype=jnp.float32)

    ref = dlinear_reference(x, W_s, b_s, W_t, b_t, k=k)

    # 1) Default path: bf16 folded weight, f32 accumulation, unpadded output.
    W_bf, bias = fold_dlinear_params(W_s, b_s, W_t, b_t, L=L, C=C, k=k)
    out = jax.block_until_ready(dlinear_forward(x, W_bf, bias, T=T, O=O))
    assert out.shape == (B, T, O), out.shape
    assert jnp.allclose(out, ref, atol=2e-2, rtol=2e-2), (
        float(jnp.max(jnp.abs(out - ref))))

    # 2) f32-weight path: verifies the algebraic fold tightly.
    W_f32, bias32 = fold_dlinear_params(W_s, b_s, W_t, b_t, L=L, C=C, k=k,
                                        weight_dtype=jnp.float32)
    out32 = jax.block_until_ready(dlinear_forward(x, W_f32, bias32, T=T, O=O))
    assert jnp.allclose(out32, ref, atol=1e-3, rtol=1e-3), (
        float(jnp.max(jnp.abs(out32 - ref))))

    # 3) Single-output-channel case (PyTorch returns [B, T]).
    W1, bias1 = fold_dlinear_params(W_s[:1], b_s[:1], W_t[:1], b_t[:1],
                                    L=L, C=C, k=k)
    out1 = jax.block_until_ready(dlinear_forward(x, W1, bias1, T=T, O=1))
    ref1 = dlinear_reference(x, W_s[:1], b_s[:1], W_t[:1], b_t[:1], k=k)
    assert out1.shape == (B, T), out1.shape
    assert jnp.allclose(out1, ref1, atol=2e-2, rtol=2e-2), (
        float(jnp.max(jnp.abs(out1 - ref1))))

    # 4) Forced K-split path (F tiled, f32 accumulator) at a larger F.
    B2, L2, C2 = 16, 64, 4
    F2 = L2 * C2
    kx2, k5, k6, k7, k8 = jax.random.split(jax.random.PRNGKey(1), 5)
    x2 = jax.random.normal(kx2, (B2, L2, C2), dtype=jnp.float32)
    W_s2 = 0.1 * jax.random.normal(k5, (O, T, F2), dtype=jnp.float32)
    b_s2 = 0.1 * jax.random.normal(k6, (O, T), dtype=jnp.float32)
    W_t2 = 0.1 * jax.random.normal(k7, (O, T, F2), dtype=jnp.float32)
    b_t2 = 0.1 * jax.random.normal(k8, (O, T), dtype=jnp.float32)
    W2, bias2 = fold_dlinear_params(W_s2, b_s2, W_t2, b_t2, L=L2, C=C2, k=k)
    out2 = jax.block_until_ready(
        dlinear_forward(x2, W2, bias2, T=T, O=O, force_ksplit=True, ksplit_tk=128))
    ref2 = dlinear_reference(x2, W_s2, b_s2, W_t2, b_t2, k=k)
    assert out2.shape == (B2, T, O), out2.shape
    assert jnp.allclose(out2, ref2, atol=3e-2, rtol=3e-2), (
        float(jnp.max(jnp.abs(out2 - ref2))))

    print("KERNEL_OK")
</pallas_src>

<mosaic_0001>
module attributes {stable_mosaic.version = 11 : i64} {
  func.func @_dlinear_kernel(%arg0: i32, %arg1: memref<8x64xf32, #tpu.memory_space<vmem>>, %arg2: memref<64x24xbf16, #tpu.memory_space<vmem>>, %arg3: memref<1x24xf32, #tpu.memory_space<vmem>>, %arg4: memref<8x24xf32, #tpu.memory_space<vmem>>) attributes {dimension_semantics = [#tpu.dimension_semantics<parallel>], iteration_bounds = array<i64: 1>, scalar_prefetch = 0 : i64, scratch_operands = 0 : i64, tpu.core_type = #tpu.core_type<tc>, window_params = [{transform_indices = @transform_0, window_bounds = array<i64: 8, 64>}, {pipeline_mode = #tpu.pipeline_mode<synchronous>, transform_indices = @transform_1, window_bounds = array<i64: 64, 24>}, {pipeline_mode = #tpu.pipeline_mode<synchronous>, transform_indices = @transform_2, window_bounds = array<i64: 1, 24>}, {transform_indices = @transform_3, window_bounds = array<i64: 8, 24>}]} {
    %c0 = arith.constant 0 : index
    %c0_0 = arith.constant 0 : index
    %0 = vector.load %arg1[%c0, %c0_0] : memref<8x64xf32, #tpu.memory_space<vmem>>, vector<8x64xf32>
    %1 = arith.truncf %0 : vector<8x64xf32> to vector<8x64xbf16>
    %c0_1 = arith.constant 0 : index
    %c0_2 = arith.constant 0 : index
    %2 = vector.load %arg2[%c0_1, %c0_2] : memref<64x24xbf16, #tpu.memory_space<vmem>>, vector<64x24xbf16>
    %cst = arith.constant dense<0.000000e+00> : vector<8x24xf32>
    %3 = tpu.matmul %1, %2, %cst {dimension_numbers = #tpu.dot_dimension_numbers<[1], [0], [0], [1], [0, 0, 1, 1], [], []>} : vector<8x64xbf16>, vector<64x24xbf16>, vector<8x24xf32> -> vector<8x24xf32>
    %c0_3 = arith.constant 0 : index
    %c0_4 = arith.constant 0 : index
    %4 = vector.load %arg3[%c0_3, %c0_4] : memref<1x24xf32, #tpu.memory_space<vmem>>, vector<1x24xf32>
    %5 = vector.broadcast %4 : vector<1x24xf32> to vector<8x24xf32>
    %6 = arith.addf %3, %5 : vector<8x24xf32>
    %c0_5 = arith.constant 0 : index
    %c0_6 = arith.constant 0 : index
    %7 = vector.load %arg4[%c0_5, %c0_6] : memref<8x24xf32, #tpu.memory_space<vmem>>, vector<8x24xf32>
    tpu.vector_store %arg4[%c0_5, %c0_6], %6 {strides = array<i32>} : memref<8x24xf32, #tpu.memory_space<vmem>>, vector<8x24xf32>,
    return
  }
  func.func @transform_0(%arg0: i32) -> (i32, i32) {
    %c0_i32 = arith.constant 0 : i32
    %c0_i32_0 = arith.constant 0 : i32
    return %arg0, %c0_i32 : i32, i32
  }
  func.func @transform_1(%arg0: i32) -> (i32, i32) {
    %c0_i32 = arith.constant 0 : i32
    %c0_i32_0 = arith.constant 0 : i32
    %c0_i32_1 = arith.constant 0 : i32
    return %c0_i32, %c0_i32_0 : i32, i32
  }
  func.func @transform_2(%arg0: i32) -> (i32, i32) {
    %c0_i32 = arith.constant 0 : i32
    %c0_i32_0 = arith.constant 0 : i32
    %c0_i32_1 = arith.constant 0 : i32
    return %c0_i32, %c0_i32_0 : i32, i32
  }
  func.func @transform_3(%arg0: i32) -> (i32, i32) {
    %c0_i32 = arith.constant 0 : i32
    %c0_i32_0 = arith.constant 0 : i32
    return %arg0, %c0_i32 : i32, i32
  }
}

</mosaic_0001>

<bundles_post_ra>
// kernel: tpu_custom_call.1
= control target key start
LH: loop header
LB: loop body
LE: loop exit
PB: predicated region body
PF: predicated region fallthrough
CT: control target
= control target key end

     0   :  { %s180_s0 = inlined_call_operand.vmem [shape: f32[8,64], index: 0, kind: input, shape index: {}]   ;;  %s181_s1 = inlined_call_operand.vmem [shape: bf16[64,24], index: 1, kind: input, shape index: {}]   ;;  %s182_s2 = inlined_call_operand.vmem [shape: f32[1,24], index: 2, kind: input, shape index: {}]   ;;  %s183_s3 = inlined_call_operand.hbm [shape: f32[8,24], index: 3, kind: output, shape index: {}]  }
   0x1   :  { %v109_v0 = vld [vmem:[%s181_s1 + $0x18] sm:$0xff]  ;;  %v108_v1 = vld [vmem:[%s181_s1 + $0x10] sm:$0xff] }
   0x2   :  { %62 = vmatpush.bf16.msra.mxu0 %v109_v0 }
   0x3   :  { %8 = vsyncpa [#allocation3], 0  ;;  %v107_v2 = vld [vmem:[%s181_s1 + $0x8] sm:$0xff]  ;;  %v106_v3 = vld [vmem:[%s181_s1] sm:$0xff]  ;;  %vm54_vm0 = vcmask 523264   ;;  %s138_s24 = smov [#allocation2]  }
   0x4   :  { %v16_v4 = vld [vmem:[%s180_s0] sm:$0xff]  ;;  %s78_s25 = sshll.u32 %s138_s24, 4  ;;  %s80_s28 = sshll.u32 %s183_s3, 4  ;;  %vm71_vm1 = vcmask 195584   ;;  %s79_s25 = int_to_ptr.vmem [resolvable:$true] %s78_s25  ;;  %s81_s28 = int_to_ptr.hbm [resolvable:$true] %s80_s28 }
   0x5   :  { %v17_v5 = vpack.c.bf16 %v16_v4, %v16_v4  ;;  %v111_v6 = vld [vmem:[%s182_s2] ss:$0 sm:$0xff] }
   0x6   :  { %63 = vmatpush.bf16.msra.mxu0 %v108_v1 }
   0xa   :  { %64 = vmatpush.bf16.msra.mxu0 %v107_v2 }
   0xe   :  { %65 = vmatpush.bf16.msra.mxu0 %v106_v3 }
  0x11   :  { %105 = vmatmul.msk.bf16.vlgmr.msra.gmra.mxu0 %vm54_vm0, %v17_v5 }
  0x8e   :  { %v67_v7 = vpop.f32.mrf.mxu0 }
  0x8f   :  { %v68_v8 = vadd.f32 %v111_v6, %v67_v7 }
  0x91   :  { %72 = vst.msk [vmem:[#allocation2] sm:$0xff] %vm71_vm1, %v68_v8 }
  0x92   :  { %83 = dma.vmem_to_hbm [thread:$0]  %s79_s25, 128, %s81_s28, [#allocation3]  }
  0x96   :  { %v69_v9 = vpop.f32.mrf.mxu0 }
  0x97   :  { %136 = dma.done.wait [#allocation3], 128  }
  0x98   :  { %137 = vsyncadd [#allocation3], 4294967168 }
  0x99   :  { %88 = vsyncpa [#allocation3], 1 }

</bundles_post_ra>
